<compile_context>
chip_gen: v5e
topology: v5e:2x2
jax: 0.10.0
libtpu: 0.0.40
codegen_flags: <defaults>
</compile_context>

<pallas_src>
import functools

import jax
import jax.numpy as jnp
from jax import lax
from jax.experimental import pallas as pl
from jax.experimental.pallas import tpu as pltpu


def mhsa_kernel(xq_ref, xkv_ref, wq_ref, wkv_ref, wo_ref, bo_ref, o_ref,
                kv_sc, ctx_sc, *, nheads, dim_head, n_actual):
    qi = pl.program_id(1)
    D = nheads * dim_head
    n_pad = kv_sc.shape[0]
    tq = ctx_sc.shape[0]

    # K|V for this batch element: one fused (n, dim) @ (dim, 2D) matmul on the
    # first query tile; kept in bf16 VMEM scratch and reused by every tile.
    @pl.when(qi == 0)
    def _():
        xkv = xkv_ref[0]                                            # (n_pad, dim) bf16
        kv = jnp.dot(xkv, wkv_ref[...], preferred_element_type=jnp.float32)
        kv_sc[...] = kv.astype(kv_sc.dtype)

    xq = xq_ref[0]                                                  # (tq, dim) bf16
    # Wq is pre-scaled by dim_head**-0.5 in the wrapper.
    q = jnp.dot(xq, wq_ref[...], preferred_element_type=jnp.float32)   # (tq, D) f32

    # Key-padding mask: only generated when the sequence was actually padded.
    if n_actual < n_pad:
        key_idx = lax.broadcasted_iota(jnp.int32, (tq, n_pad), 1)
        key_valid = key_idx < n_actual
    else:
        key_valid = None

    for h in range(nheads):
        sl = slice(h * dim_head, (h + 1) * dim_head)
        qh = q[:, sl].astype(jnp.bfloat16)                          # (tq, dh)
        kh = kv_sc[:, sl]                                           # (n_pad, dh) bf16
        vh = kv_sc[:, D + h * dim_head:D + (h + 1) * dim_head]      # (n_pad, dh) bf16

        # QK^T: contract last dims of both operands (no explicit transpose).
        s = lax.dot_general(qh, kh, (((1,), (1,)), ((), ())),
                            preferred_element_type=jnp.float32)     # (tq, n_pad) f32
        if key_valid is not None:
            s = jnp.where(key_valid, s, -1e30)

        # Numerically-stable softmax, f32, with DEFERRED normalization: the
        # cheap (tq, dim_head) context is scaled instead of the (tq, n) probs.
        s = s - jnp.max(s, axis=-1, keepdims=True)
        e = jnp.exp(s)
        denom = jnp.sum(e, axis=-1, keepdims=True)                  # (tq, 1) f32
        # TODO(synk): attention dropout omitted (module evaluated in eval mode).
        ctx_h = jnp.dot(e.astype(jnp.bfloat16), vh,
                        preferred_element_type=jnp.float32)         # (tq, dh) f32
        ctx_h = ctx_h * pl.reciprocal(denom, approx=True)
        # Head concat: write into the shared context buffer at lane offset h*dh.
        ctx_sc[:, sl] = ctx_h.astype(ctx_sc.dtype)

    # Single full-depth (K = D) output projection covering all heads at once.
    out = jnp.dot(ctx_sc[...], wo_ref[...], preferred_element_type=jnp.float32)
    out = out + bo_ref[...].astype(jnp.float32)
    # TODO(synk): output dropout omitted (eval mode identity).
    o_ref[0] = out.astype(o_ref.dtype)


def _pad_and_tile(n):
    """Return (padded sequence length, query-tile size)."""
    if n < 128:
        n_pad = ((n + 7) // 8) * 8          # sublane-align; single query tile
        return n_pad, n_pad
    n_pad = ((n + 127) // 128) * 128        # lane-align for (8, 128) tiles
    # tq = 128 bounds the (tq, n) f32 score working set and gives >= 2
    # pipeline stages for any n >= 256 (e.g. ViT n = 197 -> 256).
    return n_pad, 128


def _vmem_limit_bytes(tq, n_pad, dim, D, out_bytes):
    bf = 2
    tiles = (2 * tq * dim * bf           # xq query tiles (double-buffered)
             + 2 * n_pad * dim * bf      # full-sequence xkv
             + 2 * tq * dim * out_bytes)  # output tiles
    weights = 2 * (dim * D + dim * 2 * D + D * dim) * bf + 2 * dim * 4
    scratch = n_pad * 2 * D * bf + tq * D * bf
    live = tq * D * 4 + 2 * tq * n_pad * 4 + tq * dim * 4
    est = int((tiles + weights + scratch + live) * 1.5)
    return max(32 << 20, min(est, 64 << 20))


def multi_head_self_attention(x, wq, wk, wv, wo, bo, *, nheads, dim_head):
    bs, n, dim = x.shape
    D = nheads * dim_head
    assert wq.shape == (dim, D) and wk.shape == (dim, D)
    assert wv.shape == (dim, D) and wo.shape == (D, dim) and bo.shape == (1, dim)

    scale = float(dim_head) ** -0.5
    out_dtype = x.dtype

    n_pad, tq = _pad_and_tile(n)
    if n_pad != n:
        x = jnp.pad(x, ((0, 0), (0, n_pad - n), (0, 0)))
    n_q = n_pad // tq

    # Fold the attention scale into Wq once (host-side); fuse Wk|Wv; feed bf16
    # operands to the MXU, accumulate in f32 inside the kernel.
    xb = x.astype(jnp.bfloat16)
    wqb = (wq * scale).astype(jnp.bfloat16)
    wkvb = jnp.concatenate([wk, wv], axis=1).astype(jnp.bfloat16)   # (dim, 2D)
    wob = wo.astype(jnp.bfloat16)
    bof = bo.astype(jnp.float32)

    kernel = functools.partial(mhsa_kernel, nheads=nheads, dim_head=dim_head,
                               n_actual=n)

    out = pl.pallas_call(
        kernel,
        out_shape=jax.ShapeDtypeStruct((bs, n_pad, dim), out_dtype),
        grid_spec=pltpu.PrefetchScalarGridSpec(
            num_scalar_prefetch=0,
            grid=(bs, n_q),
            in_specs=[
                pl.BlockSpec((1, tq, dim), lambda b, q: (b, q, 0)),     # x (query tile)
                pl.BlockSpec((1, n_pad, dim), lambda b, q: (b, 0, 0)),  # x (full, for K/V)
                pl.BlockSpec((dim, D), lambda b, q: (0, 0)),            # Wq (pre-scaled)
                pl.BlockSpec((dim, 2 * D), lambda b, q: (0, 0)),        # Wk|Wv fused
                pl.BlockSpec((D, dim), lambda b, q: (0, 0)),            # Wout
                pl.BlockSpec((1, dim), lambda b, q: (0, 0)),            # b_out
            ],
            out_specs=pl.BlockSpec((1, tq, dim), lambda b, q: (b, q, 0)),
            scratch_shapes=[
                pltpu.VMEM((n_pad, 2 * D), jnp.bfloat16),   # K|V for current batch elem
                pltpu.VMEM((tq, D), jnp.bfloat16),          # per-tile context (head concat)
            ],
        ),
        compiler_params=pltpu.CompilerParams(
            # Batch is independent (megacore / 2-TC shardable); the query-tile
            # axis carries the K/V scratch, so it must stay "arbitrary".
            dimension_semantics=("parallel", "arbitrary"),
            vmem_limit_bytes=_vmem_limit_bytes(tq, n_pad, dim, D,
                                               jnp.dtype(out_dtype).itemsize)),
    )(xb, xb, wqb, wkvb, wob, bof)

    if n_pad != n:
        out = out[:, :n, :]
    return out


def _reference(x, wq, wk, wv, wo, bo, *, nheads, dim_head):
    bs, n, dim = x.shape
    scale = float(dim_head) ** -0.5
    q = (x @ wq).reshape(bs, n, nheads, dim_head).transpose(0, 2, 1, 3) * scale
    k = (x @ wk).reshape(bs, n, nheads, dim_head).transpose(0, 2, 1, 3)
    v = (x @ wv).reshape(bs, n, nheads, dim_head).transpose(0, 2, 1, 3)
    s = jnp.einsum("bhqd,bhkd->bhqk", q, k)
    w = jax.nn.softmax(s, axis=-1)
    ctx = jnp.einsum("bhqk,bhkd->bhqd", w, v)
    ctx = ctx.transpose(0, 2, 1, 3).reshape(bs, n, nheads * dim_head)
    return ctx @ wo + bo


if __name__ == "__main__":
    # Small shapes consistent with the module: dim=32, nheads=4, dim_head=16.
    bs, n, dim = 2, 8, 32
    nheads, dim_head = 4, 16
    D = nheads * dim_head

    key = jax.random.PRNGKey(0)
    kx, kq, kk, kv, ko, kb = jax.random.split(key, 6)

    x = jax.random.normal(kx, (bs, n, dim), dtype=jnp.float32)
    # Deterministic parameter init (stored as (in, out), transposed vs. torch).
    wq = jax.random.normal(kq, (dim, D), dtype=jnp.float32) * 0.05
    wk = jax.random.normal(kk, (dim, D), dtype=jnp.float32) * 0.05
    wv = jax.random.normal(kv, (dim, D), dtype=jnp.float32) * 0.05
    wo = jax.random.normal(ko, (D, dim), dtype=jnp.float32) * 0.05
    bo = jax.random.normal(kb, (1, dim), dtype=jnp.float32) * 0.05

    out = multi_head_self_attention(
        x, wq, wk, wv, wo, bo, nheads=nheads, dim_head=dim_head)
    out = jax.block_until_ready(out)

    ref = _reference(x, wq, wk, wv, wo, bo, nheads=nheads, dim_head=dim_head)
    assert out.shape == (bs, n, dim)
    # bf16 MXU operands (f32 accumulation) + approx reciprocal -> slightly
    # looser tolerance than a pure-f32 implementation.
    assert jnp.allclose(out, ref, atol=2e-2, rtol=2e-2), "mismatch vs reference"

    print("KERNEL_OK")
</pallas_src>

<mosaic_0001>
module attributes {stable_mosaic.version = 11 : i64} {
  func.func @mhsa_kernel(%arg0: i32, %arg1: i32, %arg2: memref<1x8x32xbf16, #tpu.memory_space<vmem>>, %arg3: memref<1x8x32xbf16, #tpu.memory_space<vmem>>, %arg4: memref<32x64xbf16, #tpu.memory_space<vmem>>, %arg5: memref<32x128xbf16, #tpu.memory_space<vmem>>, %arg6: memref<64x32xbf16, #tpu.memory_space<vmem>>, %arg7: memref<1x32xf32, #tpu.memory_space<vmem>>, %arg8: memref<1x8x32xf32, #tpu.memory_space<vmem>>, %arg9: memref<8x128xbf16, #tpu.memory_space<vmem>>, %arg10: memref<8x64xbf16, #tpu.memory_space<vmem>>) attributes {dimension_semantics = [#tpu.dimension_semantics<parallel>, #tpu.dimension_semantics<arbitrary>], iteration_bounds = array<i64: 2, 1>, scalar_prefetch = 0 : i64, scratch_operands = 2 : i64, tpu.core_type = #tpu.core_type<tc>, window_params = [{transform_indices = @transform_0, window_bounds = array<i64: 1, 8, 32>}, {transform_indices = @transform_1, window_bounds = array<i64: 1, 8, 32>}, {pipeline_mode = #tpu.pipeline_mode<synchronous>, transform_indices = @transform_2, window_bounds = array<i64: 32, 64>}, {pipeline_mode = #tpu.pipeline_mode<synchronous>, transform_indices = @transform_3, window_bounds = array<i64: 32, 128>}, {pipeline_mode = #tpu.pipeline_mode<synchronous>, transform_indices = @transform_4, window_bounds = array<i64: 64, 32>}, {pipeline_mode = #tpu.pipeline_mode<synchronous>, transform_indices = @transform_5, window_bounds = array<i64: 1, 32>}, {transform_indices = @transform_6, window_bounds = array<i64: 1, 8, 32>}]} {
    %c0_i32 = arith.constant 0 : i32
    %0 = arith.cmpi eq, %arg1, %c0_i32 : i32
    %1 = arith.extui %0 : i1 to i32
    %c0_i32_0 = arith.constant 0 : i32
    %2 = arith.cmpi ne, %1, %c0_i32_0 : i32
    scf.if %2 {
      %c0_48 = arith.constant 0 : index
      %c0_49 = arith.constant 0 : index
      %c0_50 = arith.constant 0 : index
      %92 = vector.load %arg3[%c0_48, %c0_49, %c0_50] : memref<1x8x32xbf16, #tpu.memory_space<vmem>>, vector<1x8x32xbf16>
      %93 = vector.shape_cast %92 : vector<1x8x32xbf16> to vector<8x32xbf16>
      %c0_51 = arith.constant 0 : index
      %c0_52 = arith.constant 0 : index
      %94 = vector.load %arg5[%c0_51, %c0_52] : memref<32x128xbf16, #tpu.memory_space<vmem>>, vector<32x128xbf16>
      %cst_53 = arith.constant dense<0.000000e+00> : vector<8x128xf32>
      %95 = tpu.matmul %93, %94, %cst_53 {dimension_numbers = #tpu.dot_dimension_numbers<[1], [0], [0], [1], [0, 0, 1, 1], [], []>} : vector<8x32xbf16>, vector<32x128xbf16>, vector<8x128xf32> -> vector<8x128xf32>
      %96 = arith.truncf %95 : vector<8x128xf32> to vector<8x128xbf16>
      %c0_54 = arith.constant 0 : index
      %c0_55 = arith.constant 0 : index
      %97 = vector.load %arg9[%c0_54, %c0_55] : memref<8x128xbf16, #tpu.memory_space<vmem>>, vector<8x128xbf16>
      tpu.vector_store %arg9[%c0_54, %c0_55], %96 {strides = array<i32>} : memref<8x128xbf16, #tpu.memory_space<vmem>>, vector<8x128xbf16>,
    } else {
    }
    %c0 = arith.constant 0 : index
    %c0_1 = arith.constant 0 : index
    %c0_2 = arith.constant 0 : index
    %3 = vector.load %arg2[%c0, %c0_1, %c0_2] : memref<1x8x32xbf16, #tpu.memory_space<vmem>>, vector<1x8x32xbf16>
    %4 = vector.shape_cast %3 : vector<1x8x32xbf16> to vector<8x32xbf16>
    %c0_3 = arith.constant 0 : index
    %c0_4 = arith.constant 0 : index
    %5 = vector.load %arg4[%c0_3, %c0_4] : memref<32x64xbf16, #tpu.memory_space<vmem>>, vector<32x64xbf16>
    %cst = arith.constant dense<0.000000e+00> : vector<8x64xf32>
    %6 = tpu.matmul %4, %5, %cst {dimension_numbers = #tpu.dot_dimension_numbers<[1], [0], [0], [1], [0, 0, 1, 1], [], []>} : vector<8x32xbf16>, vector<32x64xbf16>, vector<8x64xf32> -> vector<8x64xf32>
    %7 = vector.extract_strided_slice %6 {offsets = [0, 0], sizes = [8, 16], strides = [1, 1]} : vector<8x64xf32> to vector<8x16xf32>
    %8 = arith.truncf %7 : vector<8x16xf32> to vector<8x16xbf16>
    %c0_5 = arith.constant 0 : index
    %c0_6 = arith.constant 0 : index
    %9 = vector.load %arg9[%c0_5, %c0_6] : memref<8x128xbf16, #tpu.memory_space<vmem>>, vector<8x16xbf16>
    %c0_7 = arith.constant 0 : index
    %c64 = arith.constant 64 : index
    %10 = vector.load %arg9[%c0_7, %c64] : memref<8x128xbf16, #tpu.memory_space<vmem>>, vector<8x16xbf16>
    %cst_8 = arith.constant dense<0.000000e+00> : vector<8x8xf32>
    %11 = tpu.matmul %8, %9, %cst_8 {dimension_numbers = #tpu.dot_dimension_numbers<[1], [1], [0], [0], [0, 0, 1, 0], [], []>} : vector<8x16xbf16>, vector<8x16xbf16>, vector<8x8xf32> -> vector<8x8xf32>
    %cst_9 = arith.constant dense<0xFF800000> : vector<8xf32>
    %12 = vector.multi_reduction <maximumf>, %11, %cst_9 [1] : vector<8x8xf32> to vector<8xf32>
    %13 = vector.shape_cast %12 : vector<8xf32> to vector<8x1xf32>
    %14 = vector.broadcast %13 : vector<8x1xf32> to vector<8x8xf32>
    %15 = arith.subf %11, %14 : vector<8x8xf32>
    %16 = math.exp %15 : vector<8x8xf32>
    %cst_10 = arith.constant dense<0.000000e+00> : vector<8xf32>
    %17 = vector.multi_reduction <add>, %16, %cst_10 [1] : vector<8x8xf32> to vector<8xf32>
    %18 = vector.shape_cast %17 : vector<8xf32> to vector<8x1xf32>
    %19 = arith.truncf %16 : vector<8x8xf32> to vector<8x8xbf16>
    %cst_11 = arith.constant dense<0.000000e+00> : vector<8x16xf32>
    %20 = tpu.matmul %19, %10, %cst_11 {dimension_numbers = #tpu.dot_dimension_numbers<[1], [0], [0], [1], [0, 0, 1, 1], [], []>} : vector<8x8xbf16>, vector<8x16xbf16>, vector<8x16xf32> -> vector<8x16xf32>
    %21 = tpu.reciprocal %18 {approx = true} : vector<8x1xf32> -> vector<8x1xf32>
    %22 = vector.broadcast %21 : vector<8x1xf32> to vector<8x16xf32>
    %23 = arith.mulf %20, %22 : vector<8x16xf32>
    %24 = arith.truncf %23 : vector<8x16xf32> to vector<8x16xbf16>
    %c0_12 = arith.constant 0 : index
    %c0_13 = arith.constant 0 : index
    %25 = vector.load %arg10[%c0_12, %c0_13] : memref<8x64xbf16, #tpu.memory_space<vmem>>, vector<8x16xbf16>
    tpu.vector_store %arg10[%c0_12, %c0_13], %24 {strides = array<i32>} : memref<8x64xbf16, #tpu.memory_space<vmem>>, vector<8x16xbf16>,
    %26 = vector.extract_strided_slice %6 {offsets = [0, 16], sizes = [8, 16], strides = [1, 1]} : vector<8x64xf32> to vector<8x16xf32>
    %27 = arith.truncf %26 : vector<8x16xf32> to vector<8x16xbf16>
    %c0_14 = arith.constant 0 : index
    %c16 = arith.constant 16 : index
    %28 = vector.load %arg9[%c0_14, %c16] : memref<8x128xbf16, #tpu.memory_space<vmem>>, vector<8x16xbf16>
    %c0_15 = arith.constant 0 : index
    %c80 = arith.constant 80 : index
    %29 = vector.load %arg9[%c0_15, %c80] : memref<8x128xbf16, #tpu.memory_space<vmem>>, vector<8x16xbf16>
    %cst_16 = arith.constant dense<0.000000e+00> : vector<8x8xf32>
    %30 = tpu.matmul %27, %28, %cst_16 {dimension_numbers = #tpu.dot_dimension_numbers<[1], [1], [0], [0], [0, 0, 1, 0], [], []>} : vector<8x16xbf16>, vector<8x16xbf16>, vector<8x8xf32> -> vector<8x8xf32>
    %cst_17 = arith.constant dense<0xFF800000> : vector<8xf32>
    %31 = vector.multi_reduction <maximumf>, %30, %cst_17 [1] : vector<8x8xf32> to vector<8xf32>
    %32 = vector.shape_cast %31 : vector<8xf32> to vector<8x1xf32>
    %33 = vector.broadcast %32 : vector<8x1xf32> to vector<8x8xf32>
    %34 = arith.subf %30, %33 : vector<8x8xf32>
    %35 = math.exp %34 : vector<8x8xf32>
    %cst_18 = arith.constant dense<0.000000e+00> : vector<8xf32>
    %36 = vector.multi_reduction <add>, %35, %cst_18 [1] : vector<8x8xf32> to vector<8xf32>
    %37 = vector.shape_cast %36 : vector<8xf32> to vector<8x1xf32>
    %38 = arith.truncf %35 : vector<8x8xf32> to vector<8x8xbf16>
    %cst_19 = arith.constant dense<0.000000e+00> : vector<8x16xf32>
    %39 = tpu.matmul %38, %29, %cst_19 {dimension_numbers = #tpu.dot_dimension_numbers<[1], [0], [0], [1], [0, 0, 1, 1], [], []>} : vector<8x8xbf16>, vector<8x16xbf16>, vector<8x16xf32> -> vector<8x16xf32>
    %40 = tpu.reciprocal %37 {approx = true} : vector<8x1xf32> -> vector<8x1xf32>
    %41 = vector.broadcast %40 : vector<8x1xf32> to vector<8x16xf32>
    %42 = arith.mulf %39, %41 : vector<8x16xf32>
    %43 = arith.truncf %42 : vector<8x16xf32> to vector<8x16xbf16>
    %c0_20 = arith.constant 0 : index
    %c16_21 = arith.constant 16 : index
    %44 = vector.load %arg10[%c0_20, %c16_21] : memref<8x64xbf16, #tpu.memory_space<vmem>>, vector<8x16xbf16>
    tpu.vector_store %arg10[%c0_20, %c16_21], %43 {strides = array<i32>} : memref<8x64xbf16, #tpu.memory_space<vmem>>, vector<8x16xbf16>,
    %45 = vector.extract_strided_slice %6 {offsets = [0, 32], sizes = [8, 16], strides = [1, 1]} : vector<8x64xf32> to vector<8x16xf32>
    %46 = arith.truncf %45 : vector<8x16xf32> to vector<8x16xbf16>
    %c0_22 = arith.constant 0 : index
    %c32 = arith.constant 32 : index
    %47 = vector.load %arg9[%c0_22, %c32] : memref<8x128xbf16, #tpu.memory_space<vmem>>, vector<8x16xbf16>
    %c0_23 = arith.constant 0 : index
    %c96 = arith.constant 96 : index
    %48 = vector.load %arg9[%c0_23, %c96] : memref<8x128xbf16, #tpu.memory_space<vmem>>, vector<8x16xbf16>
    %cst_24 = arith.constant dense<0.000000e+00> : vector<8x8xf32>
    %49 = tpu.matmul %46, %47, %cst_24 {dimension_numbers = #tpu.dot_dimension_numbers<[1], [1], [0], [0], [0, 0, 1, 0], [], []>} : vector<8x16xbf16>, vector<8x16xbf16>, vector<8x8xf32> -> vector<8x8xf32>
    %cst_25 = arith.constant dense<0xFF800000> : vector<8xf32>
    %50 = vector.multi_reduction <maximumf>, %49, %cst_25 [1] : vector<8x8xf32> to vector<8xf32>
    %51 = vector.shape_cast %50 : vector<8xf32> to vector<8x1xf32>
    %52 = vector.broadcast %51 : vector<8x1xf32> to vector<8x8xf32>
    %53 = arith.subf %49, %52 : vector<8x8xf32>
    %54 = math.exp %53 : vector<8x8xf32>
    %cst_26 = arith.constant dense<0.000000e+00> : vector<8xf32>
    %55 = vector.multi_reduction <add>, %54, %cst_26 [1] : vector<8x8xf32> to vector<8xf32>
    %56 = vector.shape_cast %55 : vector<8xf32> to vector<8x1xf32>
    %57 = arith.truncf %54 : vector<8x8xf32> to vector<8x8xbf16>
    %cst_27 = arith.constant dense<0.000000e+00> : vector<8x16xf32>
    %58 = tpu.matmul %57, %48, %cst_27 {dimension_numbers = #tpu.dot_dimension_numbers<[1], [0], [0], [1], [0, 0, 1, 1], [], []>} : vector<8x8xbf16>, vector<8x16xbf16>, vector<8x16xf32> -> vector<8x16xf32>
    %59 = tpu.reciprocal %56 {approx = true} : vector<8x1xf32> -> vector<8x1xf32>
    %60 = vector.broadcast %59 : vector<8x1xf32> to vector<8x16xf32>
    %61 = arith.mulf %58, %60 : vector<8x16xf32>
    %62 = arith.truncf %61 : vector<8x16xf32> to vector<8x16xbf16>
    %c0_28 = arith.constant 0 : index
    %c32_29 = arith.constant 32 : index
    %63 = vector.load %arg10[%c0_28, %c32_29] : memref<8x64xbf16, #tpu.memory_space<vmem>>, vector<8x16xbf16>
    tpu.vector_store %arg10[%c0_28, %c32_29], %62 {strides = array<i32>} : memref<8x64xbf16, #tpu.memory_space<vmem>>, vector<8x16xbf16>,
    %64 = vector.extract_strided_slice %6 {offsets = [0, 48], sizes = [8, 16], strides = [1, 1]} : vector<8x64xf32> to vector<8x16xf32>
    %65 = arith.truncf %64 : vector<8x16xf32> to vector<8x16xbf16>
    %c0_30 = arith.constant 0 : index
    %c48 = arith.constant 48 : index
    %66 = vector.load %arg9[%c0_30, %c48] : memref<8x128xbf16, #tpu.memory_space<vmem>>, vector<8x16xbf16>
    %c0_31 = arith.constant 0 : index
    %c112 = arith.constant 112 : index
    %67 = vector.load %arg9[%c0_31, %c112] : memref<8x128xbf16, #tpu.memory_space<vmem>>, vector<8x16xbf16>
    %cst_32 = arith.constant dense<0.000000e+00> : vector<8x8xf32>
    %68 = tpu.matmul %65, %66, %cst_32 {dimension_numbers = #tpu.dot_dimension_numbers<[1], [1], [0], [0], [0, 0, 1, 0], [], []>} : vector<8x16xbf16>, vector<8x16xbf16>, vector<8x8xf32> -> vector<8x8xf32>
    %cst_33 = arith.constant dense<0xFF800000> : vector<8xf32>
    %69 = vector.multi_reduction <maximumf>, %68, %cst_33 [1] : vector<8x8xf32> to vector<8xf32>
    %70 = vector.shape_cast %69 : vector<8xf32> to vector<8x1xf32>
    %71 = vector.broadcast %70 : vector<8x1xf32> to vector<8x8xf32>
    %72 = arith.subf %68, %71 : vector<8x8xf32>
    %73 = math.exp %72 : vector<8x8xf32>
    %cst_34 = arith.constant dense<0.000000e+00> : vector<8xf32>
    %74 = vector.multi_reduction <add>, %73, %cst_34 [1] : vector<8x8xf32> to vector<8xf32>
    %75 = vector.shape_cast %74 : vector<8xf32> to vector<8x1xf32>
    %76 = arith.truncf %73 : vector<8x8xf32> to vector<8x8xbf16>
    %cst_35 = arith.constant dense<0.000000e+00> : vector<8x16xf32>
    %77 = tpu.matmul %76, %67, %cst_35 {dimension_numbers = #tpu.dot_dimension_numbers<[1], [0], [0], [1], [0, 0, 1, 1], [], []>} : vector<8x8xbf16>, vector<8x16xbf16>, vector<8x16xf32> -> vector<8x16xf32>
    %78 = tpu.reciprocal %75 {approx = true} : vector<8x1xf32> -> vector<8x1xf32>
    %79 = vector.broadcast %78 : vector<8x1xf32> to vector<8x16xf32>
    %80 = arith.mulf %77, %79 : vector<8x16xf32>
    %81 = arith.truncf %80 : vector<8x16xf32> to vector<8x16xbf16>
    %c0_36 = arith.constant 0 : index
    %c48_37 = arith.constant 48 : index
    %82 = vector.load %arg10[%c0_36, %c48_37] : memref<8x64xbf16, #tpu.memory_space<vmem>>, vector<8x16xbf16>
    tpu.vector_store %arg10[%c0_36, %c48_37], %81 {strides = array<i32>} : memref<8x64xbf16, #tpu.memory_space<vmem>>, vector<8x16xbf16>,
    %c0_38 = arith.constant 0 : index
    %c0_39 = arith.constant 0 : index
    %83 = vector.load %arg10[%c0_38, %c0_39] : memref<8x64xbf16, #tpu.memory_space<vmem>>, vector<8x64xbf16>
    %c0_40 = arith.constant 0 : index
    %c0_41 = arith.constant 0 : index
    %84 = vector.load %arg6[%c0_40, %c0_41] : memref<64x32xbf16, #tpu.memory_space<vmem>>, vector<64x32xbf16>
    %cst_42 = arith.constant dense<0.000000e+00> : vector<8x32xf32>
    %85 = tpu.matmul %83, %84, %cst_42 {dimension_numbers = #tpu.dot_dimension_numbers<[1], [0], [0], [1], [0, 0, 1, 1], [], []>} : vector<8x64xbf16>, vector<64x32xbf16>, vector<8x32xf32> -> vector<8x32xf32>
    %c0_43 = arith.constant 0 : index
    %c0_44 = arith.constant 0 : index
    %86 = vector.load %arg7[%c0_43, %c0_44] : memref<1x32xf32, #tpu.memory_space<vmem>>, vector<1x32xf32>
    %87 = vector.broadcast %86 : vector<1x32xf32> to vector<8x32xf32>
    %88 = arith.addf %85, %87 : vector<8x32xf32>
    %c0_45 = arith.constant 0 : index
    %c0_46 = arith.constant 0 : index
    %c0_47 = arith.constant 0 : index
    %89 = vector.load %arg8[%c0_45, %c0_46, %c0_47] : memref<1x8x32xf32, #tpu.memory_space<vmem>>, vector<1x8x32xf32>
    %90 = vector.shape_cast %89 : vector<1x8x32xf32> to vector<8x32xf32>
    %91 = vector.shape_cast %88 : vector<8x32xf32> to vector<1x8x32xf32>
    tpu.vector_store %arg8[%c0_45, %c0_46, %c0_47], %91 {strides = array<i32>} : memref<1x8x32xf32, #tpu.memory_space<vmem>>, vector<1x8x32xf32>,
    return
  }
  func.func @transform_0(%arg0: i32, %arg1: i32) -> (i32, i32, i32) {
    %c0_i32 = arith.constant 0 : i32
    %c0_i32_0 = arith.constant 0 : i32
    return %arg0, %arg1, %c0_i32 : i32, i32, i32
  }
  func.func @transform_1(%arg0: i32, %arg1: i32) -> (i32, i32, i32) {
    %c0_i32 = arith.constant 0 : i32
    %c0_i32_0 = arith.constant 0 : i32
    %c0_i32_1 = arith.constant 0 : i32
    return %arg0, %c0_i32, %c0_i32_0 : i32, i32, i32
  }
  func.func @transform_2(%arg0: i32, %arg1: i32) -> (i32, i32) {
    %c0_i32 = arith.constant 0 : i32
    %c0_i32_0 = arith.constant 0 : i32
    %c0_i32_1 = arith.constant 0 : i32
    return %c0_i32, %c0_i32_0 : i32, i32
  }
  func.func @transform_3(%arg0: i32, %arg1: i32) -> (i32, i32) {
    %c0_i32 = arith.constant 0 : i32
    %c0_i32_0 = arith.constant 0 : i32
    %c0_i32_1 = arith.constant 0 : i32
    return %c0_i32, %c0_i32_0 : i32, i32
  }
  func.func @transform_4(%arg0: i32, %arg1: i32) -> (i32, i32) {
    %c0_i32 = arith.constant 0 : i32
    %c0_i32_0 = arith.constant 0 : i32
    %c0_i32_1 = arith.constant 0 : i32
    return %c0_i32, %c0_i32_0 : i32, i32
  }
  func.func @transform_5(%arg0: i32, %arg1: i32) -> (i32, i32) {
    %c0_i32 = arith.constant 0 : i32
    %c0_i32_0 = arith.constant 0 : i32
    %c0_i32_1 = arith.constant 0 : i32
    return %c0_i32, %c0_i32_0 : i32, i32
  }
  func.func @transform_6(%arg0: i32, %arg1: i32) -> (i32, i32, i32) {
    %c0_i32 = arith.constant 0 : i32
    %c0_i32_0 = arith.constant 0 : i32
    return %arg0, %arg1, %c0_i32 : i32, i32, i32
  }
}

</mosaic_0001>

<bundles_post_ra>
// kernel: tpu_custom_call.1
= control target key start
LH: loop header
LB: loop body
LE: loop exit
PB: predicated region body
PF: predicated region fallthrough
CT: control target
= control target key end

     0   :  { %11 = vsyncpa [#allocation5], 0  ;;  %s1212_s0 = inlined_call_operand.vmem [shape: bf16[2,8,32], index: 0, kind: input, shape index: {}]   ;;  %s1213_s1 = inlined_call_operand.vmem [shape: bf16[2,8,32], index: 1, kind: input, shape index: {}]   ;;  %s1214_s2 = inlined_call_operand.vmem [shape: bf16[32,64], index: 2, kind: input, shape index: {}]   ;;  %s1215_s3 = inlined_call_operand.vmem [shape: bf16[32,128], index: 3, kind: input, shape index: {}]   ;;  %s1216_s4 = inlined_call_operand.vmem [shape: bf16[64,32], index: 4, kind: input, shape index: {}]   ;;  %s1217_s5 = inlined_call_operand.vmem [shape: f32[1,32], index: 5, kind: input, shape index: {}]   ;;  %s1218_s6 = inlined_call_operand.hbm [shape: f32[2,8,32], index: 6, kind: output, shape index: {}]  }
   0x1   :  { %13 = vsyncpa [#allocation5 + $0x1], 0  ;;  %s1048_s21 = smov 0   ;;  %s1050_s22 = smov 0  }
   0x2   :  { %s1052_s23 = smov 0   ;;  %s1054_s24 = smov 0  }
   0x3   :  { %s1056_s25 = smov 0   ;;  %s1058_s26 = smov 0  }
   0x4 LB: > { %s784_s27 = sadd.s32 4294967295, %s1004_s26   ;;  %s785_s28 = sadd.s32 4294967294, %s1004_s26   ;;  %s1004_s26 = sphi %s1058_s26, %s19_s26   ;;  %s1000_s25 = sphi %s1056_s25, %s1225_s25   ;;  %s996_s24 = sphi %s1054_s24, %s1224_s24   ;;  %s992_s23 = sphi %s1052_s23, %s1223_s23   ;;  %s988_s22 = sphi %s1050_s22, %s1222_s22   ;;  %s984_s21 = sphi %s1048_s21, %s1221_s21  }
   0x5   : > { %s31_s29 = sadd.s32 1, %s1000_s25  ;;  %s178_s30 = sadd.s32 1, %s992_s23 }
   0x6   : > { %p33_p0 = scmp.ge.s32.totalorder %s31_s29, 2  ;;  %p188_p1 = scmp.ne.s32.totalorder %s992_s23, %s988_s22 }
   0x7   : > { %p189_p2 = scmp.eq.s32.totalorder %s784_s27, 1  ;;  %p194_p3 = scmp.ne.s32.totalorder %s988_s22, %s984_s21 }
   0x8   : > { %s1227_s29 = smov (%p33_p0, %s31_s29), 0  ;;  %p195_p5 = scmp.eq.s32.totalorder %s785_s28, 1 }
   0x9   : > { %p1088_p4 = por %p189_p2, %p188_p1  ;;  %s173_s8 = ssub.s32 %s1000_s25, %s1227_s29 }
   0xa   : > { %p788_p6 = scmp.ge.s32.totalorder %s1004_s26, 1  ;;  %p176_p7 = scmp.eq.s32.totalorder %s173_s8, 0 }
   0xb   : > { %p1095_p8 = por %p195_p5, %p194_p3  ;;  %p242_p9 = scmp.lt.s32.totalorder %s1004_s26, 3 }
   0xc   : > { %s1101_s10 = scalar_select %p176_p7, %s992_s23, %s178_s30  }
   0xd   : > { %p243_p10 = pnand %p788_p6, %p242_p9 }
   0xe   : > { %p278_p11 = scmp.lt.s32.totalorder (!%p243_p10), %s996_s24, 1  ;;  %s1006_s13 = smov (!%p243_p10), 96  }
   0xf   : > { %246 = sbr.rel (%p243_p10) target bundleno = 1125 (0x465), region = 44  ;;  %s1007_s14 = smov (!%p243_p10), 112  }
  0x10   : > { %s1008_s15 = smov (!%p243_p10), 80   ;;  %s1009_s16 = smov (!%p243_p10), 64  }
  0x11   : > { %s1011_s18 = smov (!%p243_p10), 32   ;;  %s1012_s19 = smov (!%p243_p10), 16  }
  0x14   : > { %v840_v0 = vld [vmem:[%s1215_s3 + $0x8] sm:$0xff]  ;;  %v839_v2 = vld [vmem:[%s1215_s3] sm:$0xff]  ;;  %s279_s17 = scalar_select %p278_p11, %s996_s24, 1  ;;  %vm311_vm0 = vcmask 261120   ;;  %vm366_vm1 = vcmask 130048   ;;  %vm386_vm2 = vcmask 64512  }
  0x15   : > { %v842_v1 = vld [vmem:[%s1214_s2 + $0x8] sm:$0xff]  ;;  %321 = vmatpush.bf16.msra.mxu0 %v840_v0  ;;  %v841_v3 = vld [vmem:[%s1214_s2] sm:$0xff]  ;;  %vm405_vm3 = vcmask 1043456   ;;  %vm425_vm4 = vcmask 125952   ;;  %vm493_vm5 = vcmask 257152   ;;  %vm560_vm6 = vcmask 388352  }
  0x16   : > { %357 = vmatpush.bf16.msra.mxu1 %v842_v1  ;;  %s790_s20 = sshll.u32 %s279_s17, 2  ;;  %s1010_s17 = smov 48   ;;  %vm627_vm7 = vcmask 519552   ;;  %vm666_vm8 = vcmask 523264  }
  0x17   : > { %s288_s30 = scalar_lea.vmem %s1213_s1, %s790_s20  ;;  %s284_s12 = scalar_lea.vmem %s1212_s0, %s790_s20 }
  0x18   : > { %v294_v4 = vld [vmem:[%s288_s30] sm:$0xf] }
  0x19   : > { %322 = vmatpush.bf16.msra.mxu0 %v839_v2  ;;  %v330_v5 = vld [vmem:[%s284_s12] sm:$0xf] }
  0x1a   : > { %358 = vmatpush.bf16.msra.mxu1 %v841_v3 }
  0x1c   : > { %800 = vmatmul.msk.bf16.vlgmr.msra.gmra.mxu0 %vm311_vm0, %v294_v4 }
  0x1d   : > { %809 = vmatmul.msk.bf16.vlgmr.msra.gmra.mxu1 %vm311_vm0, %v330_v5 }
  0x99   : > { %v324_v6 = vpop.f32.mrf.mxu0 }
  0x9a   : > { %v360_v7 = vpop.f32.mrf.mxu1  ;;  %v328_v8 = vpack.c.bf16 %v324_v6, %v324_v6 }
  0x9b   : > { %v364_v20 = vpack.c.bf16 %v360_v7, %v360_v7 }
  0x9c   : > { %329 = vst [vmem:[#allocation2] sm:$0xf] %v328_v8 }
  0xa1   : > { %v326_v9 = vpop.f32.mrf.mxu0 }
  0xa2   : > { %v362_v10 = vpop.f32.mrf.mxu1 }
  0xa3   : > { %v365_v11 = vld [vmem:[#allocation2] sm:$0xf] }
  0xa4   : > { %v495_v12 = vld [vmem:[#allocation2] sm:$0xf]  ;;  %v371_v14 = vsel %vm366_vm1, %v365_v11, 0  ;;  %v398_v31 = vunpack.c.l.b16 %v365_v11 }
  0xa5   : > { %v427_v13 = vld [vmem:[#allocation2] sm:$0xf]  ;;  %v499_v15 = vunpack.c.l.b16 %v495_v12  ;;  %380 = vmatpush.bf16.xpose.msra.mxu2 %v371_v14 }
  0xa6   : > { %v432_v16 = vunpack.c.l.b16 %v427_v13  ;;  %v562_v19 = vld [vmem:[#allocation2] sm:$0xf]  ;;  %v399_v32 = vpack.c.b16 %v398_v31, %v398_v31 }
  0xa7   : > { %v500_v17 = vpack.c.b16 %v499_v15, %v499_v15  ;;  %v566_v21 = vunpack.c.l.b16 %v562_v19 }
  0xa8   : > { %v433_v18 = vpack.c.b16 %v432_v16, %v432_v16 }
  0xa9   : > { %501 = vrot.lane.b32.xlu2 %v500_v17, %s1006_s13  ;;  %v1127_v22 = vpack.c.b16 %v566_v21, %v566_v21 }
  0xaa   : > { %434 = vrot.lane.b32.xlu1 %v433_v18, %s1007_s14 }
  0xac   : > { %810 = vmatmul.msk.bf16.vlgmr.msra.gmra.mxu2 %vm366_vm1, %v364_v20 }
  0xb1   : > { %568 = vrot.lane.b32.xlu2 %v1127_v22, %s1008_s15 }
  0xb2   : > { %429 = vrot.lane.b32.xlu1 %v364_v20, %s1007_s14  ;;  %s275_s14 = sand.u32 1, %s988_s22  }
  0xb9   : > { %563 = vrot.lane.b32.xlu2 %v364_v20, %s1008_s15  ;;  %s836_s15 = sshll.u32 %s996_s24, 3  ;;  %s685_s24 = scalar_lea.sflag [#allocation5], %s275_s14 }
  0xba   : > { %496 = vrot.lane.b32.xlu1 %v364_v20, %s1006_s13 }
 0x103   : > { %v502_v23 = vpop.permute.xlu2 %501 }
 0x104   : > { %v507_v24 = vsel %vm366_vm1, %v502_v23, 0 }
 0x105   : > { %516 = vmatpush.bf16.xpose.msrb.mxu1 %v507_v24 }
 0x10b   : > { %v569_v42 = vpop.permute.xlu2 %568 }
 0x10c   : > { %v574_v45 = vsel %vm366_vm1, %v569_v42, 0 }
 0x113   : > { %v564_v48 = vpop.permute.xlu2 %563 }
 0x11c   : > { %v435_v25 = vpop.permute.xlu1 %434 }
 0x11d   : > { %v440_v43 = vsel %vm366_vm1, %v435_v25, 0 }
 0x124   : > { %v430_v26 = vpop.permute.xlu1 %429 }
 0x12c   : > { %v497_v27 = vpop.permute.xlu1 %496 }
 0x12d   : > { %814 = vmatmul.msk.bf16.vlgmr.msrb.gmra.mxu1 %vm366_vm1, %v497_v27 }
 0x12f   : > { %v382_v28 = vpop.f32.mrf.mxu2 }
 0x130   : > { %v387_v29 = vsel %vm386_vm2, %v382_v28, -inf }
 0x131   : > { %388 = vmax.xlane.f32.xlu0 %v387_v29 }
 0x137   : > { %v384_v30 = vpop.f32.mrf.mxu2 }
 0x145   : > { %400 = vrot.lane.b32.xlu0 %v399_v32, %s1009_s16  ;;  %s789_s16 = sshll.u32 %s275_s14, 3 }
 0x146   : > { %s277_s28 = scalar_lea.vmem [#allocation4], %s789_s16  ;;  %s946_s16 = scalar_lea.hbm %s1218_s6, 16 }
 0x147   : > { %s698_s30 = sshll.u32 %s277_s28, 4  ;;  %s699_s30 = int_to_ptr.vmem [resolvable:$true] %s698_s30 }
 0x14d   : > { %465 = vrot.lane.b32.xlu0 %v433_v18, %s1010_s17 }
 0x1a4   : > { %v389_v33 = vpop.xlane.xlu0 %388 }
 0x1a5   : > { %v390_v35 = vsub.f32 %v382_v28, %v389_v33 }
 0x1a7   : > { %v391_v37 = vmul.f32 1.442695, %v390_v35 }
 0x1a9   : > { %910 = vpow2.f32 %v391_v37 }
 0x1aa   : > { %v518_v34 = vpop.f32.mrf.mxu1 }
 0x1ab   : > { %v522_v36 = vsel %vm386_vm2, %v518_v34, -inf }
 0x1ac   : > { %523 = vmax.xlane.f32.xlu2 %v522_v36 }
 0x1af   : > { %v911_v39 = vpop.eup %910 }
 0x1b0   : > { %v396_v44 = vpack.c.bf16 %v911_v39, %v911_v39  ;;  %v393_v1 = vsel %vm386_vm2, %v911_v39, 0.0  ;;  %v845_v39 = vld [vmem:[%s1216_s4 + $0x10] sm:$0xff] }
 0x1b2   : > { %v520_v38 = vpop.f32.mrf.mxu1 }
 0x1b3   : > { %v846_v38 = vld [vmem:[%s1216_s4 + $0x18] sm:$0xff] }
 0x1b4   : > { %674 = vmatpush.bf16.msra.mxu1 %v846_v38 }
 0x1b7   : > { %v401_v40 = vpop.permute.xlu0 %400 }
 0x1b8   : > { %v407_v41 = vsel %vm405_vm3, %v401_v40, 0  ;;  %675 = vmatpush.bf16.msra.mxu1 %v845_v39  ;;  %v844_v40 = vld [vmem:[%s1216_s4 + $0x8] sm:$0xff] }
 0x1b9   : > { %416 = vmatpush.bf16.msra.mxu3 %v407_v41  ;;  %v843_v41 = vld [vmem:[%s1216_s4] sm:$0xff] }
 0x1bc   : > { %811 = vmatmul.msk.bf16.vlgmr.msra.gmra.mxu3 %vm386_vm2, %v396_v44  ;;  %676 = vmatpush.bf16.msra.mxu1 %v844_v40 }
 0x1bd   : > { %449 = vmatpush.bf16.xpose.msrb.mxu3 %v440_v43 }
 0x1bf   : > { %v466_v46 = vpop.permute.xlu0 %465 }
 0x1c0   : > { %v471_v47 = vsel %vm405_vm3, %v466_v46, 0  ;;  %677 = vmatpush.bf16.msra.mxu1 %v843_v41  ;;  %v909_v46 = vld [vmem:[%s1217_s5] ss:$0 sm:$0xff] }
 0x1c1   : > { %480 = vmatpush.bf16.msrb.mxu0 %v471_v47 }
 0x1c4   : > { %532 = vrot.lane.b32.xlu2 %v500_v17, %s1011_s18 }
 0x1c5   : > { %583 = vmatpush.bf16.xpose.msra.mxu3 %v574_v45 }
 0x1cc   : > { %812 = vmatmul.msk.bf16.vlgmr.msrb.gmra.mxu3 %vm366_vm1, %v430_v26 }
 0x1dc   : > { %816 = vmatmul.msk.bf16.vlgmr.msra.gmra.mxu3 %vm366_vm1, %v564_v48 }
 0x21f   : > { %v524_v49 = vpop.xlane.xlu2 %523 }
 0x220   : > { %v525_v50 = vsub.f32 %v518_v34, %v524_v49 }
 0x222   : > { %v526_v51 = vmul.f32 1.442695, %v525_v50 }
 0x224   : > { %912 = vpow2.f32 %v526_v51 }
 0x227   : > { %v533_v52 = vpop.permute.xlu2 %532 }
 0x228   : > { %v538_v53 = vsel %vm405_vm3, %v533_v52, 0 }
 0x229   : > { %547 = vmatpush.bf16.msrb.mxu2 %v538_v53 }
 0x22a   : > { %v913_v54 = vpop.eup %912 }
 0x22b   : > { %v531_v55 = vpack.c.bf16 %v913_v54, %v913_v54  ;;  %v528_v0 = vsel %vm386_vm2, %v913_v54, 0.0 }
 0x22d   : > { %815 = vmatmul.msk.bf16.vlgmr.msrb.gmra.mxu2 %vm386_vm2, %v531_v55 }
 0x23f   : > { %v418_v56 = vpop.f32.mrf.mxu3 }
 0x247   : > { %v420_v57 = vpop.f32.mrf.mxu3 }
 0x24f   : > { %v451_v58 = vpop.f32.mrf.mxu3 }
 0x250   : > { %v455_v59 = vsel %vm386_vm2, %v451_v58, -inf }
 0x251   : > { %456 = vmax.xlane.f32.xlu1 %v455_v59 }
 0x257   : > { %v453_v60 = vpop.f32.mrf.mxu3 }
 0x25f   : > { %v585_v61 = vpop.f32.mrf.mxu3 }
 0x260   : > { %v589_v62 = vsel %vm386_vm2, %v585_v61, -inf }
 0x261   : > { %590 = vmax.xlane.f32.xlu0 %v589_v62 }
 0x267   : > { %v587_v63 = vpop.f32.mrf.mxu3 }
 0x269   : > { %529 = vadd.xlane.f32.xlu0 %v528_v0 }
 0x26a   : > { %599 = vrot.lane.b32.xlu1 %v1127_v22, %s1012_s19 }
 0x294   : > { %394 = vadd.xlane.f32.xlu1 %v393_v1 }
 0x2b0   : > { %v549_v2 = vpop.f32.mrf.mxu2 }
 0x2b8   : > { %v551_v3 = vpop.f32.mrf.mxu2 }
 0x2c4   : > { %v457_v4 = vpop.xlane.xlu1 %456 }
 0x2c5   : > { %v458_v5 = vsub.f32 %v451_v58, %v457_v4 }
 0x2c7   : > { %v459_v6 = vmul.f32 1.442695, %v458_v5 }
 0x2c9   : > { %914 = vpow2.f32 %v459_v6 }
 0x2cf   : > { %v915_v7 = vpop.eup %914 }
 0x2d0   : > { %v461_v8 = vsel %vm386_vm2, %v915_v7, 0.0  ;;  %v464_v9 = vpack.c.bf16 %v915_v7, %v915_v7 }
 0x2d1   : > { %462 = vadd.xlane.f32.xlu0 %v461_v8 }
 0x2d2   : > { %813 = vmatmul.msk.bf16.vlgmr.msrb.gmra.mxu0 %vm386_vm2, %v464_v9 }
 0x2d4   : > { %v591_v10 = vpop.xlane.xlu0 %590 }
 0x2d5   : > { %v592_v11 = vsub.f32 %v585_v61, %v591_v10 }
 0x2d7   : > { %v593_v12 = vmul.f32 1.442695, %v592_v11 }
 0x2d9   : > { %916 = vpow2.f32 %v593_v12 }
 0x2dc   : > { %v600_v13 = vpop.permute.xlu1 %599  ;;  %v530_v14 = vpop.xlane.xlu0 %529 }
 0x2dd   : > { %v605_v15 = vsel %vm405_vm3, %v600_v13, 0  ;;  %918 = vrcp.f32 %v530_v14 }
 0x2de   : > { %614 = vmatpush.bf16.msra.mxu0 %v605_v15 }
 0x2df   : > { %v917_v16 = vpop.eup %916 }
 0x2e0   : > { %v598_v17 = vpack.c.bf16 %v917_v16, %v917_v16  ;;  %v595_v18 = vsel %vm386_vm2, %v917_v16, 0.0 }
 0x2e1   : > { %596 = vadd.xlane.f32.xlu2 %v595_v18 }
 0x2e2   : > { %817 = vmatmul.msk.bf16.vlgmr.msra.gmra.mxu0 %vm386_vm2, %v598_v17 }
 0x2e3   : > { %v919_v19 = vpop.eup %918 }
 0x2e4   : > { %v554_v20 = vmul.f32 %v919_v19, %v549_v2 }
 0x2e6   : > { %v555_v21 = vpack.c.bf16 %v554_v20, %v554_v20 }
 0x2e8   : > { %557 = vrot.lane.b32.xlu0 %v555_v21, %s1011_s18 }
 0x307   : > { %v395_v22 = vpop.xlane.xlu1 %394 }
 0x308   : > { %920 = vrcp.f32 %v395_v22 }
 0x30e   : > { %v921_v23 = vpop.eup %920 }
 0x30f   : > { %v423_v24 = vmul.f32 %v921_v23, %v418_v56 }
 0x311   : > { %v424_v25 = vpack.c.bf16 %v423_v24, %v423_v24 }
 0x313   : > { %426 = vst.msk [vmem:[#allocation3] sm:$0xf] %vm425_vm4, %v424_v25 }
 0x344   : > { %v463_v26 = vpop.xlane.xlu0 %462 }
 0x345   : > { %922 = vrcp.f32 %v463_v26 }
 0x34b   : > { %v923_v27 = vpop.eup %922 }
 0x34f   : > { %v482_v28 = vpop.f32.mrf.mxu0 }
 0x350   : > { %v487_v29 = vmul.f32 %v923_v27, %v482_v28 }
 0x352   : > { %v488_v30 = vpack.c.bf16 %v487_v29, %v487_v29 }
 0x354   : > { %490 = vrot.lane.b32.xlu0 %v488_v30, %s1012_s19  ;;  %v597_v31 = vpop.xlane.xlu2 %596  ;;  %s696_s19 = scalar_lea.hbm %s1218_s6, %s836_s15 }
 0x355   : > { %924 = vrcp.f32 %v597_v31  ;;  %s700_s8 = sshll.u32 %s696_s19, 4  ;;  %s701_s8 = int_to_ptr.hbm [resolvable:$true] %s700_s8 }
 0x356   : > { %s940_s11 = sshra.s32 %s701_s8, 4  ;;  %s941_s11 = int_to_ptr.hbm [resolvable:$true] %s940_s11 }
 0x357   : > { %v484_v32 = vpop.f32.mrf.mxu0  ;;  %s942_s12 = scalar_lea.hbm %s941_s11, 8  ;;  %p947_p1 = scmp.lt.s32.totalorder %s941_s11, %s1218_s6 }
 0x358   : > { %p943_p12 = scmp.ne.s32.totalorder %s941_s11, %s942_s12  ;;  %p948_p2 = scmp.lt.s32.totalorder %s946_s16, %s942_s12 }
 0x35a   : > { %v558_v42 = vpop.permute.xlu0 %557  ;;  %p944_p13 = pnand %p943_p12, %p1088_p4  ;;  %p949_p3 = por %p948_p2, %p947_p1 }
 0x35b   : > { %v925_v33 = vpop.eup %924 }
 0x35c   : > { %p945_p0 = pneg %p944_p13 }
 0x35e   : > { %p950_p5 = pnand %p949_p3, %p945_p0 }
 0x35f   : > { %v616_v34 = vpop.f32.mrf.mxu0 }
 0x360   : > { %v621_v35 = vmul.f32 %v925_v33, %v616_v34 }
 0x362   : > { %v622_v36 = vpack.c.bf16 %v621_v35, %v621_v35 }
 0x364   : > { %624 = vrot.lane.b32.xlu0 %v622_v36, %s1010_s17 }
 0x367   : > { %v618_v37 = vpop.f32.mrf.mxu0 }
 0x3c6   : > { %v491_v43 = vpop.permute.xlu0 %490 }
 0x3c7   : > { %494 = vst.msk [vmem:[#allocation3] sm:$0xf] %vm493_vm5, %v491_v43 }
 0x3c8   : > { %561 = vst.msk [vmem:[#allocation3] sm:$0xf] %vm560_vm6, %v558_v42 }
 0x3d6   : > { %v625_v44 = vpop.permute.xlu0 %624 }
 0x3d7   : > { %628 = vst.msk [vmem:[#allocation3] sm:$0xf] %vm627_vm7, %v625_v44 }
 0x3de   : > { %v629_v45 = vld [vmem:[#allocation3] sm:$0xf] }
 0x3df   : > { %834 = vmatmul.msk.bf16.vlgmr.msra.gmra.mxu1 %vm666_vm8, %v629_v45 }
 0x45c   : > { %v679_v47 = vpop.f32.mrf.mxu1 }
 0x45d   : > { %v680_v48 = vadd.f32 %v909_v46, %v679_v47 }
 0x45f   : > { %683 = vst.msk [vmem:[%s277_s28] sm:$0xff] %vm311_vm0, %v680_v48 }
 0x460   : > { %953 = shalt.err (!%p950_p5)
}
 0x461   : > { %847 = dma.vmem_to_hbm [thread:$0]  (%p1088_p4), %s699_s30, 128, %s701_s8, %s685_s24  }
 0x464   : > { %v681_v49 = vpop.f32.mrf.mxu1 }
 0x465 PF: > { %p853_p6 = scmp.ge.s32.totalorder %s1004_s26, 2  ;;  %s712_s14 = sand.u32 1, %s984_s21  }
 0x466   : > { %s713_s19 = scalar_lea.sflag [#allocation5], %s712_s14 }
 0x467   : > { %p850_p7 = pnand %p853_p6, %p1095_p8 }
 0x469   : > { %p851_p9 = pneg %p850_p7 }
 0x46b   : > { %979 = dma.done.wait (%p851_p9), %s713_s19, 128  }
 0x46c   : > { %981 = vsyncadd (%p851_p9), %s713_s19, 4294967168  ;;  %s19_s26 = sadd.s32 1, %s1004_s26   ;;  %s1221_s21 = smov %s988_s22 }
 0x46d   : > { %p16_p10 = scmp.ge.s32.totalorder %s19_s26, 4   ;;  %s1222_s22 = smov %s992_s23 }
 0x46e   : > { %s1223_s23 = smov %s1101_s10  ;;  %s1224_s24 = smov %s1000_s25 }
 0x46f   : > { %s1225_s25 = smov %s1227_s29  ;;  %18 = sbr.rel (!%p16_p10) target bundleno = 4 (0x4), region = 86 }
 0x474   :  { %719 = vsyncpa [#allocation5], 1 }
 0x475   :  { %721 = vsyncpa [#allocation5 + $0x1], 1 }

</bundles_post_ra>
